<compile_context>
chip_gen: v7x
topology: tpu7x:2x2x1
jax: 0.10.0
libtpu: 0.0.40
codegen_flags: <defaults>
</compile_context>

<pallas_src>
import functools

import jax
import jax.numpy as jnp
import numpy as np
from jax import lax
from jax.experimental import pallas as pl
from jax.experimental.pallas import tpu as pltpu


def _round_up(x, m):
    return ((x + m - 1) // m) * m


def _largest_divisor_leq(n, cap):
    """Largest divisor of n that is <= cap (n >= 1, cap >= 1)."""
    best = 1
    d = 1
    while d * d <= n:
        if n % d == 0:
            if d <= cap and d > best:
                best = d
            q = n // d
            if q <= cap and q > best:
                best = q
        d += 1
    return best


# --------------------------------------------------------------------------------------
# Pass 1: conv (single lane-dense MXU matmul) + per-tile BatchNorm partial statistics
# --------------------------------------------------------------------------------------
def _conv_stats_kernel(patch_ref, w_ref, conv_ref, stats_ref):
    # patch_ref: (TM1, K*Cin)   w_ref: (K*Cin, Cp)
    # conv_ref:  (TM1, Cp)      stats_ref: (1, 2, Cp)  [row 0 = sum, row 1 = sum of squares]
    acc = jnp.dot(patch_ref[...], w_ref[...],
                  preferred_element_type=jnp.float32)            # f32 accumulation on the MXU
    conv_ref[...] = acc.astype(conv_ref.dtype)                   # possibly bf16 intermediate

    # Stats from the f32 accumulator (zero-padded rows are exactly zero -> contribute nothing).
    s = jnp.sum(acc, axis=0, keepdims=True)                      # (1, Cp)
    sq = jnp.sum(acc * acc, axis=0, keepdims=True)               # (1, Cp)
    stats_ref[...] = jnp.concatenate([s, sq], axis=0).reshape(stats_ref.shape)


# --------------------------------------------------------------------------------------
# Pass 2: fused BatchNorm (folded into one FMA) + ReLU
# --------------------------------------------------------------------------------------
def _bn_relu_kernel(conv_ref, scale_ref, shift_ref, out_ref):
    # conv_ref: (TM2, Cp)  scale_ref / shift_ref: (1, Cp)  out_ref: (TM2, Cp)
    y = conv_ref[...].astype(jnp.float32) * scale_ref[...] + shift_ref[...]
    out_ref[...] = jnp.maximum(y, 0.0).astype(out_ref.dtype)


# --------------------------------------------------------------------------------------
# Wrapper
# --------------------------------------------------------------------------------------
def temporal_conv_net(x, w, b, gamma, beta, *, stride, dilation, eps=1e-5,
                      matmul_dtype=jnp.bfloat16, conv_store_dtype=jnp.bfloat16,
                      row_tile=256, bn_row_tile=1024, channels_last_output=False):
    """x: (N, Cin, L) (PyTorch NCL). w: (Cout, Cin, K). Returns (N, Cout, L_out) float32
    (or (N, L_out, Cout) with channels_last_output=True, for chaining TCN layers in NLC).

    `b` (the conv bias) is accepted for API parity but is a mathematical no-op: BatchNorm's
    batch-mean subtraction cancels any per-channel pre-BN bias exactly.
    """
    del b  # cancelled exactly by the BatchNorm mean subtraction
    N, Cin, L = x.shape
    Cout, _, K = w.shape
    pad = (K - 1) * dilation // 2
    L_out = (L + 2 * pad - dilation * (K - 1) - 1) // stride + 1
    R = N * L_out
    KC = K * Cin

    # ----- wrapper glue: layout + im2col (plain JAX) -----
    x_nlc = jnp.transpose(x, (0, 2, 1)).astype(jnp.float32)              # (N, L, Cin)
    x_pad = jnp.pad(x_nlc, ((0, 0), (pad, pad), (0, 0)))                 # (N, L+2p, Cin)
    cols = [x_pad[:, k * dilation: k * dilation + (L_out - 1) * stride + 1: stride, :]
            for k in range(K)]                                           # K x (N, L_out, Cin)
    patches = jnp.stack(cols, axis=2).reshape(R, KC)                     # (R, K*Cin)
    w2 = jnp.transpose(w, (2, 1, 0)).reshape(KC, Cout).astype(jnp.float32)

    # ----- tiling -----
    row_tile = max(16, _round_up(row_tile, 16))                          # bf16 sublane-safe
    TM1 = min(row_tile, _round_up(R, 16))                                # pass-1 (MXU) row tile
    R_pad = _round_up(R, TM1)
    Cp = _round_up(Cout, 128)                                            # lane-dense channels
    num_tiles1 = R_pad // TM1
    # Pass-2 row tile: as large as possible (mem-bound epilogue), a multiple of TM1 dividing R_pad.
    f = _largest_divisor_leq(num_tiles1, max(1, bn_row_tile // TM1))
    TM2 = TM1 * f
    num_tiles2 = num_tiles1 // f

    mm_bytes = jnp.dtype(matmul_dtype).itemsize
    cv_bytes = jnp.dtype(conv_store_dtype).itemsize

    patches_p = jnp.pad(patches, ((0, R_pad - R), (0, 0))).astype(matmul_dtype)
    w2_p = jnp.pad(w2, ((0, 0), (0, Cp - Cout))).astype(matmul_dtype)

    # Explicit scoped-VMEM budgets (v5e defaults to only 16 MiB; stay well under v7x's 64 MiB).
    def _vmem_limit(ws_bytes):
        return int(min(48 << 20, max(32 << 20, 2 * ws_bytes)))

    ws1 = (2 * TM1 * KC * mm_bytes + KC * Cp * mm_bytes
           + 2 * TM1 * Cp * cv_bytes + 2 * 2 * Cp * 4)
    ws2 = 2 * TM2 * Cp * cv_bytes + 2 * TM2 * Cp * 4 + 4 * Cp * 4

    # ----- pass 1: conv matmul + per-tile BN partial stats -----
    def _run_pass1(single_buffer_weights):
        w_kwargs = {}
        if single_buffer_weights:
            # The weight block is identical for every grid step; don't double-buffer it in VMEM.
            w_kwargs["pipeline_mode"] = pl.Buffered(1)
        return pl.pallas_call(
            _conv_stats_kernel,
            grid=(num_tiles1,),
            in_specs=[
                pl.BlockSpec((TM1, KC), lambda i: (i, 0)),
                pl.BlockSpec((KC, Cp), lambda i: (0, 0), **w_kwargs),
            ],
            out_specs=[
                pl.BlockSpec((TM1, Cp), lambda i: (i, 0)),
                pl.BlockSpec((1, 2, Cp), lambda i: (i, 0, 0)),
            ],
            out_shape=[
                jax.ShapeDtypeStruct((R_pad, Cp), conv_store_dtype),
                jax.ShapeDtypeStruct((num_tiles1, 2, Cp), jnp.float32),
            ],
            compiler_params=pltpu.CompilerParams(
                dimension_semantics=("parallel",),
                vmem_limit_bytes=_vmem_limit(ws1)),
        )(patches_p, w2_p)

    try:
        conv2d, tile_stats = _run_pass1(True)
    except Exception:  # pragma: no cover - jax without BlockSpec pipeline_mode / Buffered(1)
        conv2d, tile_stats = _run_pass1(False)

    # ----- tiny reduction of the partial stats -> folded BN scale/shift (1, Cp) -----
    stats = jnp.sum(tile_stats, axis=0)                                  # (2, Cp)
    mean = stats[0] / R
    var = jnp.maximum(stats[1] / R - mean * mean, 0.0)                   # biased batch variance
    gamma_p = jnp.pad(gamma.astype(jnp.float32), (0, Cp - Cout))
    beta_p = jnp.pad(beta.astype(jnp.float32), (0, Cp - Cout))
    g_inv_std = gamma_p * lax.rsqrt(var + eps)
    scale = g_inv_std.reshape(1, Cp)
    shift = (beta_p - mean * g_inv_std).reshape(1, Cp)

    # ----- pass 2: fused BN FMA + ReLU (mem-bound; large row tiles) -----
    y2d = pl.pallas_call(
        _bn_relu_kernel,
        grid=(num_tiles2,),
        in_specs=[
            pl.BlockSpec((TM2, Cp), lambda i: (i, 0)),
            pl.BlockSpec((1, Cp), lambda i: (0, 0)),
            pl.BlockSpec((1, Cp), lambda i: (0, 0)),
        ],
        out_specs=pl.BlockSpec((TM2, Cp), lambda i: (i, 0)),
        out_shape=jax.ShapeDtypeStruct((R_pad, Cp), jnp.float32),
        compiler_params=pltpu.CompilerParams(
            dimension_semantics=("parallel",),
            vmem_limit_bytes=_vmem_limit(ws2)),
    )(conv2d, scale, shift)

    # ----- wrapper glue: strip padding, split rows back into (N, L_out) -----
    y = y2d[:R, :Cout].reshape(N, L_out, Cout)
    if channels_last_output:
        return y                                                         # (N, L_out, Cout)
    return jnp.transpose(y, (0, 2, 1))                                   # (N, Cout, L_out)


# --------------------------------------------------------------------------------------
# Pure-JAX reference reproducing the PyTorch forward
# --------------------------------------------------------------------------------------
def _reference(x, w, b, gamma, beta, *, stride, dilation, eps=1e-5):
    K = w.shape[-1]
    pad = (K - 1) * dilation // 2
    y = lax.conv_general_dilated(
        x, w, window_strides=(stride,), padding=[(pad, pad)],
        rhs_dilation=(dilation,),
        dimension_numbers=('NCH', 'OIH', 'NCH'),
        preferred_element_type=jnp.float32)
    y = y + b[None, :, None]
    mean = jnp.mean(y, axis=(0, 2), keepdims=True)
    var = jnp.mean((y - mean) ** 2, axis=(0, 2), keepdims=True)
    y = (y - mean) * lax.rsqrt(var + eps) * gamma[None, :, None] + beta[None, :, None]
    return jnp.maximum(y, 0.0)


if __name__ == "__main__":
    # Module hyper-params (kernel_size=3, stride=1, dilation=2 -> 'same' length output)
    N, C_IN, C_OUT, L = 2, 4, 8, 16
    K, STRIDE, DILATION = 3, 1, 2

    key = jax.random.PRNGKey(0)
    kx, kw, kb = jax.random.split(key, 3)
    x = jax.random.normal(kx, (N, C_IN, L), dtype=jnp.float32)
    w = 0.3 * jax.random.normal(kw, (C_OUT, C_IN, K), dtype=jnp.float32)
    b = 0.1 * jax.random.normal(kb, (C_OUT,), dtype=jnp.float32)
    gamma = jnp.ones((C_OUT,), jnp.float32)   # nn.BatchNorm1d default init
    beta = jnp.zeros((C_OUT,), jnp.float32)

    ref = jax.block_until_ready(
        _reference(x, w, b, gamma, beta, stride=STRIDE, dilation=DILATION))

    # Default fast path: bf16 MXU inputs + bf16 conv intermediate (f32 accumulation/epilogue).
    out = jax.block_until_ready(
        temporal_conv_net(x, w, b, gamma, beta, stride=STRIDE, dilation=DILATION))
    np.testing.assert_allclose(np.asarray(out), np.asarray(ref), rtol=5e-2, atol=5e-2)

    # Full-f32 fallback path: tight numerical parity with the PyTorch module.
    out_f32 = jax.block_until_ready(
        temporal_conv_net(x, w, b, gamma, beta, stride=STRIDE, dilation=DILATION,
                          matmul_dtype=jnp.float32, conv_store_dtype=jnp.float32))
    np.testing.assert_allclose(np.asarray(out_f32), np.asarray(ref), rtol=2e-3, atol=2e-3)

    print("KERNEL_OK")
</pallas_src>

<mosaic_0001>
module attributes {stable_mosaic.version = 11 : i64} {
  func.func @_conv_stats_kernel(%arg0: i32, %arg1: memref<32x12xbf16, #tpu.memory_space<vmem>>, %arg2: memref<12x128xbf16, #tpu.memory_space<vmem>>, %arg3: memref<32x128xbf16, #tpu.memory_space<vmem>>, %arg4: memref<1x2x128xf32, #tpu.memory_space<vmem>>) attributes {dimension_semantics = [#tpu.dimension_semantics<parallel>], iteration_bounds = array<i64: 1>, scalar_prefetch = 0 : i64, scratch_operands = 0 : i64, tpu.core_type = #tpu.core_type<tc>, window_params = [{transform_indices = @transform_0, window_bounds = array<i64: 32, 12>}, {pipeline_mode = #tpu.pipeline_mode<synchronous>, transform_indices = @transform_1, window_bounds = array<i64: 12, 128>}, {transform_indices = @transform_2, window_bounds = array<i64: 32, 128>}, {transform_indices = @transform_3, window_bounds = array<i64: 1, 2, 128>}]} {
    %c0 = arith.constant 0 : index
    %c0_0 = arith.constant 0 : index
    %0 = vector.load %arg1[%c0, %c0_0] : memref<32x12xbf16, #tpu.memory_space<vmem>>, vector<32x12xbf16>
    %c0_1 = arith.constant 0 : index
    %c0_2 = arith.constant 0 : index
    %1 = vector.load %arg2[%c0_1, %c0_2] : memref<12x128xbf16, #tpu.memory_space<vmem>>, vector<12x128xbf16>
    %cst = arith.constant dense<0.000000e+00> : vector<32x128xf32>
    %2 = tpu.matmul %0, %1, %cst {dimension_numbers = #tpu.dot_dimension_numbers<[1], [0], [0], [1], [0, 0, 1, 1], [], []>} : vector<32x12xbf16>, vector<12x128xbf16>, vector<32x128xf32> -> vector<32x128xf32>
    %3 = arith.truncf %2 : vector<32x128xf32> to vector<32x128xbf16>
    %c0_3 = arith.constant 0 : index
    %c0_4 = arith.constant 0 : index
    %4 = vector.load %arg3[%c0_3, %c0_4] : memref<32x128xbf16, #tpu.memory_space<vmem>>, vector<32x128xbf16>
    tpu.vector_store %arg3[%c0_3, %c0_4], %3 {strides = array<i32>} : memref<32x128xbf16, #tpu.memory_space<vmem>>, vector<32x128xbf16>,
    %cst_5 = arith.constant dense<0.000000e+00> : vector<128xf32>
    %5 = vector.multi_reduction <add>, %2, %cst_5 [0] : vector<32x128xf32> to vector<128xf32>
    %6 = vector.shape_cast %5 : vector<128xf32> to vector<1x128xf32>
    %7 = arith.mulf %2, %2 : vector<32x128xf32>
    %cst_6 = arith.constant dense<0.000000e+00> : vector<128xf32>
    %8 = vector.multi_reduction <add>, %7, %cst_6 [0] : vector<32x128xf32> to vector<128xf32>
    %9 = vector.shape_cast %8 : vector<128xf32> to vector<1x128xf32>
    %10 = tpu.concatenate %6, %9 in 0 : vector<1x128xf32>, vector<1x128xf32> -> vector<2x128xf32>
    %11 = vector.shape_cast %10 : vector<2x128xf32> to vector<1x2x128xf32>
    %c0_7 = arith.constant 0 : index
    %c0_8 = arith.constant 0 : index
    %c0_9 = arith.constant 0 : index
    %12 = vector.load %arg4[%c0_7, %c0_8, %c0_9] : memref<1x2x128xf32, #tpu.memory_space<vmem>>, vector<1x2x128xf32>
    tpu.vector_store %arg4[%c0_7, %c0_8, %c0_9], %11 {strides = array<i32>} : memref<1x2x128xf32, #tpu.memory_space<vmem>>, vector<1x2x128xf32>,
    return
  }
  func.func @transform_0(%arg0: i32) -> (i32, i32) {
    %c0_i32 = arith.constant 0 : i32
    %c0_i32_0 = arith.constant 0 : i32
    return %arg0, %c0_i32 : i32, i32
  }
  func.func @transform_1(%arg0: i32) -> (i32, i32) {
    %c0_i32 = arith.constant 0 : i32
    %c0_i32_0 = arith.constant 0 : i32
    %c0_i32_1 = arith.constant 0 : i32
    return %c0_i32, %c0_i32_0 : i32, i32
  }
  func.func @transform_2(%arg0: i32) -> (i32, i32) {
    %c0_i32 = arith.constant 0 : i32
    %c0_i32_0 = arith.constant 0 : i32
    return %arg0, %c0_i32 : i32, i32
  }
  func.func @transform_3(%arg0: i32) -> (i32, i32, i32) {
    %c0_i32 = arith.constant 0 : i32
    %c0_i32_0 = arith.constant 0 : i32
    %c0_i32_1 = arith.constant 0 : i32
    return %arg0, %c0_i32, %c0_i32_0 : i32, i32, i32
  }
}

module attributes {stable_mosaic.version = 11 : i64} {
  func.func @_conv_stats_kernel(%arg0: i32, %arg1: memref<32x12xbf16, #tpu.memory_space<vmem>>, %arg2: memref<12x128xbf16, #tpu.memory_space<vmem>>, %arg3: memref<32x128xbf16, #tpu.memory_space<vmem>>, %arg4: memref<1x2x128xf32, #tpu.memory_space<vmem>>) attributes {dimension_semantics = [#tpu.dimension_semantics<parallel>], iteration_bounds = array<i64: 1>, scalar_prefetch = 0 : i64, scratch_operands = 0 : i64, tpu.core_type = #tpu.core_type<tc>, window_params = [{transform_indices = @transform_0, window_bounds = array<i64: 32, 12>}, {pipeline_mode = #tpu.pipeline_mode<synchronous>, transform_indices = @transform_1, window_bounds = array<i64: 12, 128>}, {transform_indices = @transform_2, window_bounds = array<i64: 32, 128>}, {transform_indices = @transform_3, window_bounds = array<i64: 1, 2, 128>}]} {
    %c0 = arith.constant 0 : index
    %c0_0 = arith.constant 0 : index
    %0 = vector.load %arg1[%c0, %c0_0] : memref<32x12xbf16, #tpu.memory_space<vmem>>, vector<32x12xbf16>
    %c0_1 = arith.constant 0 : index
    %c0_2 = arith.constant 0 : index
    %1 = vector.load %arg2[%c0_1, %c0_2] : memref<12x128xbf16, #tpu.memory_space<vmem>>, vector<12x128xbf16>
    %cst = arith.constant dense<0.000000e+00> : vector<32x128xf32>
    %2 = tpu.matmul %0, %1, %cst {dimension_numbers = #tpu.dot_dimension_numbers<[1], [0], [0], [1], [0, 0, 1, 1], [], []>} : vector<32x12xbf16>, vector<12x128xbf16>, vector<32x128xf32> -> vector<32x128xf32>
    %3 = arith.truncf %2 : vector<32x128xf32> to vector<32x128xbf16>
    %c0_3 = arith.constant 0 : index
    %c0_4 = arith.constant 0 : index
    %4 = vector.load %arg3[%c0_3, %c0_4] : memref<32x128xbf16, #tpu.memory_space<vmem>>, vector<32x128xbf16>
    tpu.vector_store %arg3[%c0_3, %c0_4], %3 {strides = array<i32>} : memref<32x128xbf16, #tpu.memory_space<vmem>>, vector<32x128xbf16>,
    %cst_5 = arith.constant dense<0.000000e+00> : vector<128xf32>
    %5 = vector.multi_reduction <add>, %2, %cst_5 [0] : vector<32x128xf32> to vector<128xf32>
    %6 = vector.shape_cast %5 : vector<128xf32> to vector<1x128xf32>
    %7 = arith.mulf %2, %2 : vector<32x128xf32>
    %cst_6 = arith.constant dense<0.000000e+00> : vector<128xf32>
    %8 = vector.multi_reduction <add>, %7, %cst_6 [0] : vector<32x128xf32> to vector<128xf32>
    %9 = vector.shape_cast %8 : vector<128xf32> to vector<1x128xf32>
    %10 = tpu.concatenate %6, %9 in 0 : vector<1x128xf32>, vector<1x128xf32> -> vector<2x128xf32>
    %11 = vector.shape_cast %10 : vector<2x128xf32> to vector<1x2x128xf32>
    %c0_7 = arith.constant 0 : index
    %c0_8 = arith.constant 0 : index
    %c0_9 = arith.constant 0 : index
    %12 = vector.load %arg4[%c0_7, %c0_8, %c0_9] : memref<1x2x128xf32, #tpu.memory_space<vmem>>, vector<1x2x128xf32>
    tpu.vector_store %arg4[%c0_7, %c0_8, %c0_9], %11 {strides = array<i32>} : memref<1x2x128xf32, #tpu.memory_space<vmem>>, vector<1x2x128xf32>,
    return
  }
  func.func @transform_0(%arg0: i32) -> (i32, i32) {
    %c0_i32 = arith.constant 0 : i32
    %c0_i32_0 = arith.constant 0 : i32
    return %arg0, %c0_i32 : i32, i32
  }
  func.func @transform_1(%arg0: i32) -> (i32, i32) {
    %c0_i32 = arith.constant 0 : i32
    %c0_i32_0 = arith.constant 0 : i32
    %c0_i32_1 = arith.constant 0 : i32
    return %c0_i32, %c0_i32_0 : i32, i32
  }
  func.func @transform_2(%arg0: i32) -> (i32, i32) {
    %c0_i32 = arith.constant 0 : i32
    %c0_i32_0 = arith.constant 0 : i32
    return %arg0, %c0_i32 : i32, i32
  }
  func.func @transform_3(%arg0: i32) -> (i32, i32, i32) {
    %c0_i32 = arith.constant 0 : i32
    %c0_i32_0 = arith.constant 0 : i32
    %c0_i32_1 = arith.constant 0 : i32
    return %arg0, %c0_i32, %c0_i32_0 : i32, i32, i32
  }
}

</mosaic_0001>

<bundles_post_ra>
// kernel: tpu_custom_call.1
= control target key start
LH: loop header
LB: loop body
LE: loop exit
PB: predicated region body
PF: predicated region fallthrough
CT: control target
= control target key end

     0   :  { %9 = vsyncpa [#allocation3], 0  ;;  %vm44_vm0 = vcmask 1045504   ;;  %vm37_vm1 = vcmask 97280   ;;  %s318_s0 = inlined_call_operand.vmem [shape: bf16[32,12], index: 0, kind: input, shape index: {}]   ;;  %s319_s1 = inlined_call_operand.vmem [shape: bf16[12,128], index: 1, kind: input, shape index: {}]   ;;  %s320_s2 = inlined_call_operand.hbm [shape: bf16[32,128], index: 2, kind: output, shape index: {0}]   ;;  %s321_s3 = inlined_call_operand.hbm [shape: f32[1,2,128], index: 3, kind: output, shape index: {1}]  }
   0x1   :  { %v210_v0 = vld [vmem:[%s319_s1] sm:$0x3f]   ;;  %v212_v3 = vld [vmem:[%s318_s0 + $0x8] sm:$0xff]  }
   0x2   :  { %v211_v1 = vld [vmem:[%s318_s0] sm:$0xff]   ;;  %205 = vmatprep.subr.msk.bf16.mxu0 %vm44_vm0, %v210_v0  ;;  %v46_v2 = vsel %vm44_vm0, %v210_v0, 0 }
   0x3   :  { %200 = vmatpush3.bf16.msra.mxu0 %v46_v2  ;;  %201 = vmatprep.mubr.msk.bf16.mxu0 %vm37_vm1, %v211_v1 }
   0x4   :  { %10 = vsyncpa [#allocation5], 0  ;;  %s261_s18 = smov [#allocation2]  }
   0x5   :  { %s147_s1 = sshll.u32 %s261_s18, 4  ;;  %s148_s1 = int_to_ptr.vmem [resolvable:$true] %s147_s1 }
   0x6   :  { %202 = vmatmul.mubr.msk.bf16.vlgmr.msra.gmra.mrb[0].mxu0 %vm37_vm1, %v212_v3  ;;  %s213_s0 = scalar_lea.vmem %s148_s1, 256  ;;  %p218_p1 = scmp.lt.s32.totalorder %s148_s1, %s148_s1 }
   0x7   :  { %p214_p0 = scmp.ne.s32.totalorder %s148_s1, %s213_s0  ;;  %p219_p2 = scmp.lt.s32.totalorder %s213_s0, %s213_s0 }
   0x9   :  { %p220_p3 = por %p219_p2, %p218_p1 }
   0xb   :  { %p221_p4 = pnand %p220_p3, %p214_p0 }
  0xd9   :  { %v203_v4 = vpop.f32.mrb[0].mxu0 }
  0xda   :  { %v82_v5 = vpop.f32.mrb[1].mxu0  ;;  %v128_v13 = vmul.f32 %v203_v4, %v203_v4 }
  0xdb   :  { %v204_v6 = vpop.f32.mrb[2].mxu0  ;;  %v126_v9 = vmul.f32 %v82_v5, %v82_v5 }
  0xdc   :  { %v193_v7 = vpack.c.bf16 %v204_v6, %v203_v4  ;;  %v85_v8 = vpop.f32.mrb[3].mxu0 }
  0xdd   :  { %v188_v10 = vpack.c.bf16 %v85_v8, %v82_v5  ;;  %v117_v11 = vadd.f32 %v85_v8, %v82_v5  ;;  %v127_v12 = vmul.f32 %v85_v8, %v85_v8 }
  0xde   :  { %195 = vst [vmem:[#allocation2 + $0x8] sm:$0xff] %v193_v7  }
  0xdf   :  { %189 = vst [vmem:[#allocation2] sm:$0xff] %v188_v10   ;;  %v118_v14 = vadd.f32 %v203_v4, %v117_v11  ;;  %v130_v15 = vadd.f32 %v127_v12, %v126_v9 }
  0xe0   :  { %224 = shalt.err (!%p221_p4)
}
  0xe1   :  { %s225_s21 = scalar_lea.hbm %s320_s2, 256 }
  0xe2   :  { %p226_p5 = scmp.ne.s32.totalorder %s320_s2, %s225_s21  ;;  %p229_p6 = scmp.lt.u32.totalorder %s225_s21, %s320_s2 }
  0xe4   :  { %p231_p7 = pnand %p229_p6, %p226_p5 }
  0xe6   :  { %234 = shalt.err (!%p231_p7)
}
  0xe7   :  { %s262_s26 = smov 64   ;;  %s263_s27 = smov 4   ;;  %v129_v16 = vmul.f32 %v204_v6, %v204_v6  ;;  %v119_v17 = vadd.f32 %v204_v6, %v118_v14  ;;  %v131_v18 = vadd.f32 %v130_v15, %v128_v13  ;;  %vm139_vm2 = vcmask 1040384  }
  0xe8   :  { %153 = dma.vmem_to_hbm [thread:$0]  %s148_s1, 256, %s320_s2, [#allocation3], %s262_s26, %s262_s26, %s263_s27  }
  0xe9   :  { %v120_v19 = vrot.slane %v119_v17, 4  ;;  %v132_v20 = vadd.f32 %v131_v18, %v129_v16  ;;  %s264_s30 = smov [#allocation4]  }
  0xea   :  { %s160_s4 = sshll.u32 %s264_s30, 4  ;;  %s161_s4 = int_to_ptr.vmem [resolvable:$true] %s160_s4 }
  0xeb   :  { %v121_v21 = vadd.f32 %v120_v19, %v119_v17  ;;  %v133_v22 = vrot.slane %v132_v20, 4  ;;  %s235_s2 = scalar_lea.vmem %s161_s4, 32  ;;  %p240_p9 = scmp.lt.s32.totalorder %s161_s4, %s161_s4 }
  0xec   :  { %p236_p8 = scmp.ne.s32.totalorder %s161_s4, %s235_s2  ;;  %p241_p10 = scmp.lt.s32.totalorder %s235_s2, %s235_s2 }
  0xed   :  { %v122_v23 = vrot.slane %v121_v21, 2  ;;  %v134_v24 = vadd.f32 %v133_v22, %v132_v20 }
  0xee   :  { %p242_p11 = por %p241_p10, %p240_p9 }
  0xef   :  { %v123_v25 = vadd.f32 %v122_v23, %v121_v21  ;;  %v135_v26 = vrot.slane %v134_v24, 2 }
  0xf0   :  { %p243_p12 = pnand %p242_p11, %p236_p8 }
  0xf1   :  { %v124_v27 = vrot.slane %v123_v25, 1  ;;  %v136_v28 = vadd.f32 %v135_v26, %v134_v24 }
  0xf3   :  { %v137_v29 = vrot.slane %v136_v28, 1  ;;  %v125_v30 = vadd.f32 %v124_v27, %v123_v25 }
  0xf5   :  { %v138_v31 = vadd.f32 %v137_v29, %v136_v28 }
  0xf7   :  { %v140_v32 = vsel %vm139_vm2, %v125_v30, %v138_v31 }
  0xf8   :  { %141 = vst [vmem:[#allocation4] sm:$0x3] %v140_v32 }
  0xf9   :  { %246 = shalt.err (!%p243_p12)
}
  0xfa   :  { %s247_s7 = scalar_lea.hbm %s321_s3, 32 }
  0xfb   :  { %p248_p13 = scmp.ne.s32.totalorder %s321_s3, %s247_s7  ;;  %p251_p0 = scmp.lt.u32.totalorder %s247_s7, %s321_s3 }
  0xfd   :  { %p253_p1 = pnand %p251_p0, %p248_p13 }
  0xff   :  { %256 = shalt.err (!%p253_p1)
}
 0x100   :  { %163 = dma.vmem_to_hbm [thread:$0]  %s161_s4, 32, %s321_s3, [#allocation5]  }
 0x101   :  { %257 = dma.done.wait [#allocation3], 256  }
 0x102   :  { %258 = vsyncadd [#allocation3], 4294967040 }
 0x103   :  { %259 = dma.done.wait [#allocation5], 32  }
 0x104   :  { %260 = vsyncadd [#allocation5], 4294967264 }
 0x105   :  { %170 = vsyncpa [#allocation3], 1 }
 0x106   :  { %171 = vsyncpa [#allocation5], 1 }

// kernel: tpu_custom_call.1
= control target key start
LH: loop header
LB: loop body
LE: loop exit
PB: predicated region body
PF: predicated region fallthrough
CT: control target
= control target key end

     0   :  { %9 = vsyncpa [#allocation3], 0  ;;  %vm44_vm0 = vcmask 1045504   ;;  %vm37_vm1 = vcmask 97280   ;;  %s318_s0 = inlined_call_operand.vmem [shape: bf16[32,12], index: 0, kind: input, shape index: {}]   ;;  %s319_s1 = inlined_call_operand.vmem [shape: bf16[12,128], index: 1, kind: input, shape index: {}]   ;;  %s320_s2 = inlined_call_operand.hbm [shape: bf16[32,128], index: 2, kind: output, shape index: {0}]   ;;  %s321_s3 = inlined_call_operand.hbm [shape: f32[1,2,128], index: 3, kind: output, shape index: {1}]  }
   0x1   :  { %v210_v0 = vld [vmem:[%s319_s1] sm:$0x3f]   ;;  %v212_v3 = vld [vmem:[%s318_s0 + $0x8] sm:$0xff]  }
   0x2   :  { %v211_v1 = vld [vmem:[%s318_s0] sm:$0xff]   ;;  %205 = vmatprep.subr.msk.bf16.mxu0 %vm44_vm0, %v210_v0  ;;  %v46_v2 = vsel %vm44_vm0, %v210_v0, 0 }
   0x3   :  { %200 = vmatpush3.bf16.msra.mxu0 %v46_v2  ;;  %201 = vmatprep.mubr.msk.bf16.mxu0 %vm37_vm1, %v211_v1 }
   0x4   :  { %10 = vsyncpa [#allocation5], 0  ;;  %s261_s18 = smov [#allocation2]  }
   0x5   :  { %s147_s1 = sshll.u32 %s261_s18, 4  ;;  %s148_s1 = int_to_ptr.vmem [resolvable:$true] %s147_s1 }
   0x6   :  { %202 = vmatmul.mubr.msk.bf16.vlgmr.msra.gmra.mrb[0].mxu0 %vm37_vm1, %v212_v3  ;;  %s213_s0 = scalar_lea.vmem %s148_s1, 256  ;;  %p218_p1 = scmp.lt.s32.totalorder %s148_s1, %s148_s1 }
   0x7   :  { %p214_p0 = scmp.ne.s32.totalorder %s148_s1, %s213_s0  ;;  %p219_p2 = scmp.lt.s32.totalorder %s213_s0, %s213_s0 }
   0x9   :  { %p220_p3 = por %p219_p2, %p218_p1 }
   0xb   :  { %p221_p4 = pnand %p220_p3, %p214_p0 }
  0xd9   :  { %v203_v4 = vpop.f32.mrb[0].mxu0 }
  0xda   :  { %v82_v5 = vpop.f32.mrb[1].mxu0  ;;  %v128_v13 = vmul.f32 %v203_v4, %v203_v4 }
  0xdb   :  { %v204_v6 = vpop.f32.mrb[2].mxu0  ;;  %v126_v9 = vmul.f32 %v82_v5, %v82_v5 }
  0xdc   :  { %v193_v7 = vpack.c.bf16 %v204_v6, %v203_v4  ;;  %v85_v8 = vpop.f32.mrb[3].mxu0 }
  0xdd   :  { %v188_v10 = vpack.c.bf16 %v85_v8, %v82_v5  ;;  %v117_v11 = vadd.f32 %v85_v8, %v82_v5  ;;  %v127_v12 = vmul.f32 %v85_v8, %v85_v8 }
  0xde   :  { %195 = vst [vmem:[#allocation2 + $0x8] sm:$0xff] %v193_v7  }
  0xdf   :  { %189 = vst [vmem:[#allocation2] sm:$0xff] %v188_v10   ;;  %v118_v14 = vadd.f32 %v203_v4, %v117_v11  ;;  %v130_v15 = vadd.f32 %v127_v12, %v126_v9 }
  0xe0   :  { %224 = shalt.err (!%p221_p4)
}
  0xe1   :  { %s225_s21 = scalar_lea.hbm %s320_s2, 256 }
  0xe2   :  { %p226_p5 = scmp.ne.s32.totalorder %s320_s2, %s225_s21  ;;  %p229_p6 = scmp.lt.u32.totalorder %s225_s21, %s320_s2 }
  0xe4   :  { %p231_p7 = pnand %p229_p6, %p226_p5 }
  0xe6   :  { %234 = shalt.err (!%p231_p7)
}
  0xe7   :  { %s262_s26 = smov 64   ;;  %s263_s27 = smov 4   ;;  %v129_v16 = vmul.f32 %v204_v6, %v204_v6  ;;  %v119_v17 = vadd.f32 %v204_v6, %v118_v14  ;;  %v131_v18 = vadd.f32 %v130_v15, %v128_v13  ;;  %vm139_vm2 = vcmask 1040384  }
  0xe8   :  { %153 = dma.vmem_to_hbm [thread:$0]  %s148_s1, 256, %s320_s2, [#allocation3], %s262_s26, %s262_s26, %s263_s27  }
  0xe9   :  { %v120_v19 = vrot.slane %v119_v17, 4  ;;  %v132_v20 = vadd.f32 %v131_v18, %v129_v16  ;;  %s264_s30 = smov [#allocation4]  }
  0xea   :  { %s160_s4 = sshll.u32 %s264_s30, 4  ;;  %s161_s4 = int_to_ptr.vmem [resolvable:$true] %s160_s4 }
  0xeb   :  { %v121_v21 = vadd.f32 %v120_v19, %v119_v17  ;;  %v133_v22 = vrot.slane %v132_v20, 4  ;;  %s235_s2 = scalar_lea.vmem %s161_s4, 32  ;;  %p240_p9 = scmp.lt.s32.totalorder %s161_s4, %s161_s4 }
  0xec   :  { %p236_p8 = scmp.ne.s32.totalorder %s161_s4, %s235_s2  ;;  %p241_p10 = scmp.lt.s32.totalorder %s235_s2, %s235_s2 }
  0xed   :  { %v122_v23 = vrot.slane %v121_v21, 2  ;;  %v134_v24 = vadd.f32 %v133_v22, %v132_v20 }
  0xee   :  { %p242_p11 = por %p241_p10, %p240_p9 }
  0xef   :  { %v123_v25 = vadd.f32 %v122_v23, %v121_v21  ;;  %v135_v26 = vrot.slane %v134_v24, 2 }
  0xf0   :  { %p243_p12 = pnand %p242_p11, %p236_p8 }
  0xf1   :  { %v124_v27 = vrot.slane %v123_v25, 1  ;;  %v136_v28 = vadd.f32 %v135_v26, %v134_v24 }
  0xf3   :  { %v137_v29 = vrot.slane %v136_v28, 1  ;;  %v125_v30 = vadd.f32 %v124_v27, %v123_v25 }
  0xf5   :  { %v138_v31 = vadd.f32 %v137_v29, %v136_v28 }
  0xf7   :  { %v140_v32 = vsel %vm139_vm2, %v125_v30, %v138_v31 }
  0xf8   :  { %141 = vst [vmem:[#allocation4] sm:$0x3] %v140_v32 }
  0xf9   :  { %246 = shalt.err (!%p243_p12)
}
  0xfa   :  { %s247_s7 = scalar_lea.hbm %s321_s3, 32 }
  0xfb   :  { %p248_p13 = scmp.ne.s32.totalorder %s321_s3, %s247_s7  ;;  %p251_p0 = scmp.lt.u32.totalorder %s247_s7, %s321_s3 }
  0xfd   :  { %p253_p1 = pnand %p251_p0, %p248_p13 }
  0xff   :  { %256 = shalt.err (!%p253_p1)
}
 0x100   :  { %163 = dma.vmem_to_hbm [thread:$0]  %s161_s4, 32, %s321_s3, [#allocation5]  }
 0x101   :  { %257 = dma.done.wait [#allocation3], 256  }
 0x102   :  { %258 = vsyncadd [#allocation3], 4294967040 }
 0x103   :  { %259 = dma.done.wait [#allocation5], 32  }
 0x104   :  { %260 = vsyncadd [#allocation5], 4294967264 }
 0x105   :  { %170 = vsyncpa [#allocation3], 1 }
 0x106   :  { %171 = vsyncpa [#allocation5], 1 }

</bundles_post_ra>
